<compile_context>
chip_gen: v5e
topology: v5e:2x2
jax: 0.10.0
libtpu: 0.0.40
codegen_flags: <defaults>
</compile_context>

<pallas_src>
import functools

import jax
import jax.numpy as jnp
from jax.experimental import pallas as pl
from jax.experimental.pallas import tpu as pltpu


# ----------------------------- helpers --------------------------------------


def _round_up(x, m):
    return ((x + m - 1) // m) * m


def _largest_aligned_divisor(dim, cap, align):
    """Largest multiple of `align` that divides `dim` and is <= cap."""
    cap = max(align, min(cap, dim))
    cap -= cap % align
    d = cap
    while d >= align:
        if dim % d == 0:
            return d
        d -= align
    return align


def _vmem_budget_bytes():
    # Per-generation scoped-VMEM budget: ~75% of physical capacity
    # (v5e/v6e: 128 MiB -> ~96 MiB; v7x: 64 MiB -> ~48 MiB).
    try:
        cap = pltpu.get_tpu_info().vmem_capacity_bytes
    except Exception:
        cap = 64 * 1024 * 1024  # conservative fallback (v7x-sized)
    return min(int(cap * 3 // 4), 100 * 1024 * 1024)


def _apply_epilogue(y, b, activation):
    y = y + b.astype(jnp.float32)
    if activation == "relu":
        y = jnp.maximum(y, 0.0)
    elif activation == "lrelu":
        y = jnp.where(y >= 0.0, y, 0.2 * y)  # LeakyReLU(0.2), per LinearBlock
    elif activation == "tanh":
        y = jnp.tanh(y)
    elif activation == "none":
        pass
    else:
        raise ValueError(f"unsupported activation: {activation}")
    return y


def _weight_spec(block_shape, index_map, multi_buffer):
    if multi_buffer:
        try:
            return pl.BlockSpec(block_shape, index_map,
                                pipeline_mode=pl.Buffered(3))
        except TypeError:  # pipeline_mode unavailable in this jax version
            pass
    return pl.BlockSpec(block_shape, index_map)


# ----------------------------- kernels ---------------------------------------


def _lb_kernel_single_k(x_ref, w_ref, b_ref, o_ref, *, activation, mxu_dtype):
    # Whole K fits in one tile: single fused matmul + bias + activation.
    y = jnp.dot(x_ref[...].astype(mxu_dtype), w_ref[...].astype(mxu_dtype),
                preferred_element_type=jnp.float32)
    o_ref[...] = _apply_epilogue(y, b_ref[...], activation).astype(o_ref.dtype)


def _lb_kernel_multi_k_accout(x_ref, w_ref, b_ref, o_ref, *,
                              activation, mxu_dtype):
    # f32 output: accumulate directly into the resident output block.
    k = pl.program_id(2)

    @pl.when(k == 0)
    def _():
        o_ref[...] = jnp.zeros_like(o_ref)

    o_ref[...] += jnp.dot(x_ref[...].astype(mxu_dtype),
                          w_ref[...].astype(mxu_dtype),
                          preferred_element_type=jnp.float32)

    @pl.when(k == pl.num_programs(2) - 1)
    def _():
        o_ref[...] = _apply_epilogue(o_ref[...], b_ref[...], activation)


def _lb_kernel_multi_k_scratch(x_ref, w_ref, b_ref, o_ref, acc_ref, *,
                               activation, mxu_dtype):
    # Narrow output dtype: keep an f32 accumulator in VMEM scratch.
    k = pl.program_id(2)

    @pl.when(k == 0)
    def _():
        acc_ref[...] = jnp.zeros_like(acc_ref)

    acc_ref[...] += jnp.dot(x_ref[...].astype(mxu_dtype),
                            w_ref[...].astype(mxu_dtype),
                            preferred_element_type=jnp.float32)

    @pl.when(k == pl.num_programs(2) - 1)
    def _():
        o_ref[...] = _apply_epilogue(
            acc_ref[...], b_ref[...], activation).astype(o_ref.dtype)


# ----------------------------- pallas launcher -------------------------------


def _linear_block_pallas(x_p, w_p, b_p, *, activation, mxu_dtype, out_dtype,
                         max_tm, max_tn, max_tk):
    m_pad, k_pad = x_p.shape
    k_pad_w, n_pad = w_p.shape
    assert k_pad_w == k_pad

    tm = _largest_aligned_divisor(m_pad, max_tm, 8)
    tn = _largest_aligned_divisor(n_pad, max_tn, 128)
    tk = _largest_aligned_divisor(k_pad, max_tk, 128)

    # Megacore (v7x): make sure at least one "parallel" axis has >= 2 blocks so
    # both TensorCores get work.  No-op on 1-TC chips.
    if (m_pad // tm) == 1 and (n_pad // tn) == 1 and n_pad >= 256:
        tn = _largest_aligned_divisor(n_pad, n_pad // 2, 128)

    grid_m, grid_n, grid_k = m_pad // tm, n_pad // tn, k_pad // tk

    out_itemsize = jnp.dtype(out_dtype).itemsize
    cost = pl.CostEstimate(
        flops=2 * m_pad * n_pad * k_pad,
        transcendentals=m_pad * n_pad if activation == "tanh" else 0,
        bytes_accessed=(m_pad * k_pad * x_p.dtype.itemsize
                        + k_pad * n_pad * w_p.dtype.itemsize
                        + n_pad * 4
                        + m_pad * n_pad * out_itemsize),
    )
    out_shape = jax.ShapeDtypeStruct((m_pad, n_pad), out_dtype)
    vmem_limit = _vmem_budget_bytes()

    # Weight-streaming regime: one M tile, weight streamed over many steps.
    multi_buffer = (grid_m == 1) and (grid_n * grid_k >= 3)

    if grid_k == 1:
        # Single K step: collapse the reduction axis, no scratch, no pl.when.
        kernel = functools.partial(_lb_kernel_single_k,
                                   activation=activation, mxu_dtype=mxu_dtype)
        return pl.pallas_call(
            kernel,
            out_shape=out_shape,
            grid_spec=pltpu.PrefetchScalarGridSpec(
                num_scalar_prefetch=0,
                grid=(grid_m, grid_n),
                in_specs=[
                    pl.BlockSpec((tm, tk), lambda i, j: (i, 0)),
                    _weight_spec((tk, tn), lambda i, j: (0, j), multi_buffer),
                    pl.BlockSpec((1, tn), lambda i, j: (0, j)),
                ],
                out_specs=pl.BlockSpec((tm, tn), lambda i, j: (i, j)),
            ),
            compiler_params=pltpu.CompilerParams(
                dimension_semantics=("parallel", "parallel"),
                vmem_limit_bytes=vmem_limit,
            ),
            cost_estimate=cost,
        )(x_p, w_p, b_p)

    accumulate_in_out = jnp.dtype(out_dtype) == jnp.dtype(jnp.float32)
    if accumulate_in_out:
        kernel = functools.partial(_lb_kernel_multi_k_accout,
                                   activation=activation, mxu_dtype=mxu_dtype)
        scratch = []
    else:
        kernel = functools.partial(_lb_kernel_multi_k_scratch,
                                   activation=activation, mxu_dtype=mxu_dtype)
        scratch = [pltpu.VMEM((tm, tn), jnp.float32)]

    return pl.pallas_call(
        kernel,
        out_shape=out_shape,
        grid_spec=pltpu.PrefetchScalarGridSpec(
            num_scalar_prefetch=0,
            grid=(grid_m, grid_n, grid_k),
            in_specs=[
                pl.BlockSpec((tm, tk), lambda i, j, k: (i, k)),
                _weight_spec((tk, tn), lambda i, j, k: (k, j), multi_buffer),
                pl.BlockSpec((1, tn), lambda i, j, k: (0, j)),
            ],
            out_specs=pl.BlockSpec((tm, tn), lambda i, j, k: (i, j)),
            scratch_shapes=scratch,
        ),
        compiler_params=pltpu.CompilerParams(
            dimension_semantics=("parallel", "parallel", "arbitrary"),
            vmem_limit_bytes=vmem_limit,
        ),
        cost_estimate=cost,
    )(x_p, w_p, b_p)


# ----------------------------- public wrappers -------------------------------


def make_linear_block(weight, bias, *, activation="relu", norm="none",
                      use_bf16_mxu=False, max_tm=512, max_tn=512, max_tk=2048):
    """Pre-pads/transposes the parameters once and returns apply(x).

    weight: (N, K) nn.Linear layout; bias: (N,).
    """
    assert norm == "none", "only norm='none' (the module default) is implemented"
    N, K = weight.shape
    assert bias.shape == (N,)

    k_pad = _round_up(K, 128)
    n_pad = _round_up(N, 128)

    w_store_dtype = jnp.bfloat16 if use_bf16_mxu else weight.dtype
    mxu_dtype = jnp.bfloat16 if use_bf16_mxu else jnp.float32

    # Hoisted out of the hot path: one-time weight transpose + pad, bias pad.
    w_p = jnp.pad(weight.T.astype(w_store_dtype),
                  ((0, k_pad - K), (0, n_pad - N)))          # (K_pad, N_pad)
    b_p = jnp.pad(bias.astype(jnp.float32),
                  (0, n_pad - N)).reshape(1, n_pad)          # (1, N_pad)

    def apply(x):
        M, Kx = x.shape
        assert Kx == K
        m_pad = _round_up(M, 8)
        if m_pad == M and k_pad == K:
            x_p = x  # already aligned: skip the copy entirely
        else:
            x_p = jnp.pad(x, ((0, m_pad - M), (0, k_pad - K)))
        out = _linear_block_pallas(
            x_p, w_p, b_p, activation=activation, mxu_dtype=mxu_dtype,
            out_dtype=x.dtype, max_tm=max_tm, max_tn=max_tn, max_tk=max_tk)
        return out[:M, :N]

    return apply


def linear_block(x, weight, bias, *, activation="relu", norm="none",
                 use_bf16_mxu=False):
    """One-shot convenience wrapper: activation(x @ weight.T + bias)."""
    return make_linear_block(weight, bias, activation=activation, norm=norm,
                             use_bf16_mxu=use_bf16_mxu)(x)


# ----------------------------- reference & demo ------------------------------


def _reference(x, weight, bias, activation="relu"):
    y = (x.astype(jnp.float32) @ weight.astype(jnp.float32).T
         + bias.astype(jnp.float32))
    if activation == "relu":
        y = jnp.maximum(y, 0.0)
    elif activation == "lrelu":
        y = jnp.where(y >= 0.0, y, 0.2 * y)
    elif activation == "tanh":
        y = jnp.tanh(y)
    return y


if __name__ == "__main__":
    # --- module-default shapes: batch=8, input_dim=32, output_dim=64 ---------
    batch, input_dim, output_dim = 8, 32, 64
    key = jax.random.PRNGKey(0)
    kx, kw, kb = jax.random.split(key, 3)

    x = jax.random.normal(kx, (batch, input_dim), dtype=jnp.float32)
    bound = 1.0 / (input_dim ** 0.5)  # nn.Linear default init range
    weight = jax.random.uniform(
        kw, (output_dim, input_dim), jnp.float32, -bound, bound)
    bias = jax.random.uniform(kb, (output_dim,), jnp.float32, -bound, bound)

    ref = _reference(x, weight, bias, "relu")

    # 1) Default f32-MXU path (single fused K step, no scratch).
    lb = make_linear_block(weight, bias, activation="relu")
    out = jax.block_until_ready(lb(x))
    assert out.shape == (batch, output_dim)
    assert jnp.allclose(out, ref, atol=1e-5, rtol=1e-5), "f32 path mismatch"

    # 2) bf16-MXU path (f32 accumulation) — looser tolerance.
    lb_bf16 = make_linear_block(weight, bias, activation="relu",
                                use_bf16_mxu=True)
    out_bf16 = jax.block_until_ready(lb_bf16(x))
    assert jnp.allclose(out_bf16, ref, atol=5e-2, rtol=5e-2), "bf16 mismatch"

    # 3) Multi-K-step path (accumulate into resident f32 output block),
    #    exercised by forcing a small K tile.
    M2, K2, N2 = 16, 256, 128
    kx2, kw2, kb2 = jax.random.split(jax.random.PRNGKey(1), 3)
    x2 = jax.random.normal(kx2, (M2, K2), dtype=jnp.float32)
    b2d = 1.0 / (K2 ** 0.5)
    w2 = jax.random.uniform(kw2, (N2, K2), jnp.float32, -b2d, b2d)
    b2 = jax.random.uniform(kb2, (N2,), jnp.float32, -b2d, b2d)
    lb2 = make_linear_block(w2, b2, activation="tanh", max_tk=128)
    out2 = jax.block_until_ready(lb2(x2))
    ref2 = _reference(x2, w2, b2, "tanh")
    assert jnp.allclose(out2, ref2, atol=1e-4, rtol=1e-4), "multi-K mismatch"

    # 4) Multi-K-step path with narrow output dtype (f32 VMEM scratch), bf16 in.
    lb3 = make_linear_block(w2, b2, activation="lrelu",
                            use_bf16_mxu=True, max_tk=128)
    out3 = jax.block_until_ready(lb3(x2.astype(jnp.bfloat16)))
    ref3 = _reference(x2, w2, b2, "lrelu")
    assert out3.dtype == jnp.bfloat16
    assert jnp.allclose(out3.astype(jnp.float32), ref3,
                        atol=5e-2, rtol=5e-2), "bf16 multi-K mismatch"

    print("KERNEL_OK")
</pallas_src>

<mosaic_0001>
module attributes {stable_mosaic.version = 11 : i64} {
  func.func @_lb_kernel_single_k(%arg0: i32, %arg1: i32, %arg2: memref<8x128xf32, #tpu.memory_space<vmem>>, %arg3: memref<128x128xf32, #tpu.memory_space<vmem>>, %arg4: memref<1x128xf32, #tpu.memory_space<vmem>>, %arg5: memref<8x128xf32, #tpu.memory_space<vmem>>) attributes {dimension_semantics = [#tpu.dimension_semantics<parallel>, #tpu.dimension_semantics<parallel>], iteration_bounds = array<i64: 1, 1>, scalar_prefetch = 0 : i64, scratch_operands = 0 : i64, tpu.core_type = #tpu.core_type<tc>, window_params = [{transform_indices = @transform_0, window_bounds = array<i64: 8, 128>}, {transform_indices = @transform_1, window_bounds = array<i64: 128, 128>}, {transform_indices = @transform_2, window_bounds = array<i64: 1, 128>}, {transform_indices = @transform_3, window_bounds = array<i64: 8, 128>}]} {
    %c0 = arith.constant 0 : index
    %c0_0 = arith.constant 0 : index
    %0 = vector.load %arg2[%c0, %c0_0] : memref<8x128xf32, #tpu.memory_space<vmem>>, vector<8x128xf32>
    %c0_1 = arith.constant 0 : index
    %c0_2 = arith.constant 0 : index
    %1 = vector.load %arg3[%c0_1, %c0_2] : memref<128x128xf32, #tpu.memory_space<vmem>>, vector<128x128xf32>
    %cst = arith.constant dense<0.000000e+00> : vector<8x128xf32>
    %2 = tpu.matmul %0, %1, %cst {dimension_numbers = #tpu.dot_dimension_numbers<[1], [0], [0], [1], [0, 0, 1, 1], [], []>} : vector<8x128xf32>, vector<128x128xf32>, vector<8x128xf32> -> vector<8x128xf32>
    %c0_3 = arith.constant 0 : index
    %c0_4 = arith.constant 0 : index
    %3 = vector.load %arg4[%c0_3, %c0_4] : memref<1x128xf32, #tpu.memory_space<vmem>>, vector<1x128xf32>
    %4 = vector.broadcast %3 : vector<1x128xf32> to vector<8x128xf32>
    %5 = arith.addf %2, %4 : vector<8x128xf32>
    %cst_5 = arith.constant 0.000000e+00 : f32
    %6 = vector.broadcast %cst_5 : f32 to vector<8x128xf32>
    %7 = arith.maximumf %5, %6 : vector<8x128xf32>
    %c0_6 = arith.constant 0 : index
    %c0_7 = arith.constant 0 : index
    %8 = vector.load %arg5[%c0_6, %c0_7] : memref<8x128xf32, #tpu.memory_space<vmem>>, vector<8x128xf32>
    tpu.vector_store %arg5[%c0_6, %c0_7], %7 {strides = array<i32>} : memref<8x128xf32, #tpu.memory_space<vmem>>, vector<8x128xf32>,
    return
  }
  func.func @transform_0(%arg0: i32, %arg1: i32) -> (i32, i32) {
    %c0_i32 = arith.constant 0 : i32
    %c0_i32_0 = arith.constant 0 : i32
    return %arg0, %c0_i32 : i32, i32
  }
  func.func @transform_1(%arg0: i32, %arg1: i32) -> (i32, i32) {
    %c0_i32 = arith.constant 0 : i32
    %c0_i32_0 = arith.constant 0 : i32
    return %c0_i32, %arg1 : i32, i32
  }
  func.func @transform_2(%arg0: i32, %arg1: i32) -> (i32, i32) {
    %c0_i32 = arith.constant 0 : i32
    %c0_i32_0 = arith.constant 0 : i32
    return %c0_i32, %arg1 : i32, i32
  }
  func.func @transform_3(%arg0: i32, %arg1: i32) -> (i32, i32) {
    %c0_i32 = arith.constant 0 : i32
    return %arg0, %arg1 : i32, i32
  }
}

</mosaic_0001>

<bundles_post_ra>
// kernel: tpu_custom_call.1
= control target key start
LH: loop header
LB: loop body
LE: loop exit
PB: predicated region body
PF: predicated region fallthrough
CT: control target
= control target key end

     0   :  { %8 = vsyncpa [#allocation3], 0  ;;  %s227_s0 = inlined_call_operand.hbm [shape: f32[8,128], index: 0, kind: input, shape index: {}]   ;;  %s228_s1 = inlined_call_operand.hbm [shape: f32[128,128], index: 1, kind: input, shape index: {}]   ;;  %s229_s2 = inlined_call_operand.vmem [shape: f32[1,128], index: 2, kind: input, shape index: {}]   ;;  %s230_s3 = inlined_call_operand.hbm [shape: f32[8,128], index: 3, kind: output, shape index: {}]  }
   0x1   :  { %9 = vsyncpa [#allocation6], 0 }
   0x2   :  { %10 = vsyncpa [#allocation4], 0  ;;  %s16_s14 = sshll.u32 %s227_s0, 4  ;;  %s190_s15 = smov [#allocation2]   ;;  %s17_s14 = int_to_ptr.hbm [resolvable:$true] %s16_s14 }
   0x3   :  { %s18_s16 = sshll.u32 %s190_s15, 4  ;;  %s26_s19 = sshll.u32 %s228_s1, 4  ;;  %s19_s16 = int_to_ptr.vmem [resolvable:$true] %s18_s16  ;;  %s27_s19 = int_to_ptr.hbm [resolvable:$true] %s26_s19 }
   0x4   :  { %21 = dma.hbm_to_vmem [thread:$0]  %s17_s14, 128, %s19_s16, [#allocation3]  }
   0x5   :  { %s191_s20 = smov [#allocation5]   ;;  %s192_s22 = smov 128  }
   0x6   :  { %s28_s21 = sshll.u32 %s191_s20, 4  ;;  %s193_s23 = smov 8   ;;  %s29_s21 = int_to_ptr.vmem [resolvable:$true] %s28_s21 }
   0x7   :  { %34 = dma.hbm_to_vmem [thread:$0]  %s27_s19, 2048, %s29_s21, [#allocation6], %s192_s22, %s192_s22, %s193_s23  }
   0x8   :  { %184 = dma.done.wait [#allocation3], 128  }
   0x9   :  { %185 = vsyncadd [#allocation3], 4294967168 }
   0xa   :  { %186 = dma.done.wait [#allocation6], 2048  }
   0xb   :  { %187 = vsyncadd [#allocation6], 4294965248  ;;  %v61_v0 = vld [vmem:[#allocation5 + $0x78] sm:$0xff]  ;;  %v60_v1 = vld [vmem:[#allocation5 + $0x70] sm:$0xff]  ;;  %s194_s24 = smov [#allocation7]   ;;  %s95_s28 = sshll.u32 %s230_s3, 4  ;;  %s96_s28 = int_to_ptr.hbm [resolvable:$true] %s95_s28 }
   0xc   :  { %66 = vmatpush.msra.mxu0 %v61_v0  ;;  %v59_v2 = vld [vmem:[#allocation5 + $0x68] sm:$0xff]  ;;  %v58_v3 = vld [vmem:[#allocation5 + $0x60] sm:$0xff]  ;;  %v57_v4 = vld [vmem:[#allocation5 + $0x58] sm:$0xff]  ;;  %s93_s25 = sshll.u32 %s194_s24, 4  ;;  %s94_s25 = int_to_ptr.vmem [resolvable:$true] %s93_s25 }
   0xd   :  { %v56_v5 = vld [vmem:[#allocation5 + $0x50] sm:$0xff]  ;;  %v55_v6 = vld [vmem:[#allocation5 + $0x48] sm:$0xff]  ;;  %v54_v7 = vld [vmem:[#allocation5 + $0x40] sm:$0xff] }
   0xe   :  { %67 = vmatpush.msra.mxu0 %v60_v1  ;;  %v53_v8 = vld [vmem:[#allocation5 + $0x38] sm:$0xff]  ;;  %v52_v9 = vld [vmem:[#allocation5 + $0x30] sm:$0xff]  ;;  %v51_v10 = vld [vmem:[#allocation5 + $0x28] sm:$0xff] }
   0xf   :  { %v50_v11 = vld [vmem:[#allocation5 + $0x20] sm:$0xff]  ;;  %v49_v12 = vld [vmem:[#allocation5 + $0x18] sm:$0xff]  ;;  %v48_v13 = vld [vmem:[#allocation5 + $0x10] sm:$0xff] }
  0x10   :  { %68 = vmatpush.msra.mxu0 %v59_v2  ;;  %v47_v14 = vld [vmem:[#allocation5 + $0x8] sm:$0xff]  ;;  %v46_v15 = vld [vmem:[#allocation5] sm:$0xff]  ;;  %v45_v16 = vld [vmem:[#allocation2] sm:$0xff] }
  0x11   :  { %v111_v17 = vld [vmem:[%s229_s2] ss:$0 sm:$0xff] }
  0x12   :  { %69 = vmatpush.msra.mxu0 %v58_v3 }
  0x14   :  { %70 = vmatpush.msra.mxu0 %v57_v4 }
  0x16   :  { %71 = vmatpush.msra.mxu0 %v56_v5 }
  0x18   :  { %72 = vmatpush.msra.mxu0 %v55_v6 }
  0x1a   :  { %73 = vmatpush.msra.mxu0 %v54_v7 }
  0x1c   :  { %74 = vmatpush.msra.mxu0 %v53_v8 }
  0x1e   :  { %75 = vmatpush.msra.mxu0 %v52_v9 }
  0x20   :  { %76 = vmatpush.msra.mxu0 %v51_v10 }
  0x22   :  { %77 = vmatpush.msra.mxu0 %v50_v11 }
  0x24   :  { %78 = vmatpush.msra.mxu0 %v49_v12 }
  0x26   :  { %79 = vmatpush.msra.mxu0 %v48_v13 }
  0x28   :  { %80 = vmatpush.msra.mxu0 %v47_v14 }
  0x2a   :  { %81 = vmatpush.msra.mxu0 %v46_v15 }
  0x2b   :  { %82 = vmatmul.f32.vlgmr.msra.gmra.mxu0 %v45_v16 }
  0xa8   :  { %v83_v18 = vpop.f32.mrf.mxu0 }
  0xa9   :  { %v84_v19 = vadd.f32 %v111_v17, %v83_v18 }
  0xab   :  { %v86_v20 = vmax.f32 %v84_v19, 0.0 }
  0xad   :  { %87 = vst [vmem:[#allocation7] sm:$0xff] %v86_v20 }
  0xae   :  { %98 = dma.vmem_to_hbm [thread:$0]  %s94_s25, 128, %s96_s28, [#allocation4]  }
  0xaf   :  { %188 = dma.done.wait [#allocation4], 128  }
  0xb0   :  { %189 = vsyncadd [#allocation4], 4294967168 }
  0xb1   :  { %103 = vsyncpa [#allocation3], 1 }
  0xb2   :  { %104 = vsyncpa [#allocation6], 1 }
  0xb3   :  { %105 = vsyncpa [#allocation4], 1 }

</bundles_post_ra>
